<compile_context>
chip_gen: v7x
topology: tpu7x:2x2x1
jax: 0.10.0
libtpu: 0.0.40
codegen_flags: <defaults>
</compile_context>

<pallas_src>
import functools

import jax
import jax.numpy as jnp
from jax.experimental import pallas as pl
from jax.experimental.pallas import tpu as pltpu


# --------------------------------------------------------------------------
# Kernel
# --------------------------------------------------------------------------
def _moe_kernel(num_active_ref, active_expert_ref,
                a_ref, w1_ref, w2_ref, rw_ref,
                out_ref, acc_ref, *, tn):
    i = pl.program_id(0)          # M tile
    j = pl.program_id(1)          # intermediate (N//2) tile
    s = pl.program_id(2)          # compacted expert slot (innermost!)

    @pl.when(jnp.logical_and(j == 0, s == 0))
    def _init():
        acc_ref[...] = jnp.zeros_like(acc_ref)

    # Skip experts with no token routed to them in this M-tile. Their weight
    # block indices also repeat the previous step (clamped in the wrapper), so
    # no weight DMA is issued for skipped slots.
    @pl.when(s < num_active_ref[i])
    def _compute():
        a = a_ref[...]                                             # (tm, K) bf16
        # Merged GEMM1: one MXU push produces [gate | up] for this i-tile.
        h1 = jnp.dot(a, w1_ref[0],
                     preferred_element_type=jnp.float32)           # (tm, 2*tn) f32
        gate = h1[:, :tn]                                          # lane-aligned
        up = h1[:, tn:]
        # silu_and_mul in f32 (VPU + EUP), routing weight folded in here so the
        # per-token scale costs (tm, tn) multiplies instead of (tm, K).
        act = (gate * jax.nn.sigmoid(gate) * up) * rw_ref[0]       # (tm, tn) f32
        # Partial GEMM2 over this intermediate tile, f32 accumulation.
        h2 = jnp.dot(act.astype(w2_ref.dtype), w2_ref[0],
                     preferred_element_type=jnp.float32)           # (tm, K) f32
        acc_ref[...] += h2

    @pl.when(jnp.logical_and(j == pl.num_programs(1) - 1,
                             s == pl.num_programs(2) - 1))
    def _finalize():
        out_ref[...] = acc_ref[...].astype(out_ref.dtype)


# --------------------------------------------------------------------------
# Tile / VMEM sizing helpers (generation-aware)
# --------------------------------------------------------------------------
def _round_up(x, m):
    return ((x + m - 1) // m) * m


def _vmem_capacity_bytes():
    try:
        info = pltpu.get_tpu_info()
        for name in ("vmem_capacity_bytes", "vmem_size_bytes", "vmem_bytes"):
            v = getattr(info, name, None)
            if v:
                return int(v)
    except Exception:
        pass
    return 64 * 1024 * 1024   # conservative fallback (v7x per-TC VMEM)


def _vmem_footprint_bytes(tm, tn, K, act_bytes=2, w_bytes=2):
    # Double-buffered weight tiles: merged w1 (K, 2tn) + w2 (tn, K).
    w = 2 * (K * 2 * tn + tn * K) * w_bytes
    # Activations + output (double-buffered) + f32 accumulator scratch.
    a_out = 2 * 2 * tm * K * act_bytes
    acc = tm * K * 4
    rw = 2 * tm * 128 * 4            # (1, tm, 1) block lane-pads to 128
    return w + a_out + acc + rw


def select_moe_tiles(K, I, *, tm_hint=256, vmem_budget=None):
    """Pick the intermediate tile size tn and a VMEM budget / limit, once."""
    capacity = _vmem_capacity_bytes()
    budget = int(0.75 * capacity) if vmem_budget is None else int(vmem_budget)
    cands = [t for t in (1024, 512, 256, 128) if t <= I and I % t == 0]
    if not cands:
        cands = [I]                   # tiny I: single full-extent tile
    tn = cands[-1]
    for t in cands:                   # largest tn that fits the budget
        if _vmem_footprint_bytes(tm_hint, t, K) <= budget:
            tn = t
            break
    vmem_limit = int(min(capacity,
                         max(budget,
                             _vmem_footprint_bytes(tm_hint, tn, K) + (4 << 20))))
    return tn, budget, vmem_limit


def _select_tm(M, K, tn, vmem_budget):
    # Grow tm for prefill (raises arithmetic intensity: weight tiles amortized
    # over more tokens), shrink for decode, and never blow the VMEM budget.
    if M <= 128:
        tm = max(16, _round_up(M, 16))
    elif M >= 512:
        tm = 512
    elif M >= 256:
        tm = 256
    else:
        tm = 128
    while tm > 16 and _vmem_footprint_bytes(tm, tn, K) > vmem_budget:
        tm = max(16, tm // 2)
    return tm


# --------------------------------------------------------------------------
# One-time (weight-load-time) preprocessing -- hoisted off the forward path
# --------------------------------------------------------------------------
def prepare_moe_weights(w1, w2, tn):
    """w1 (E, N, K), w2 (E, K, N//2) -> (w1gu (E, K, N), w2t (E, N//2, K)).

    w1gu interleaves gate/up per tn-tile so one (1, K, 2*tn) block DMA fetches
    both halves; both outputs contract their leading (K / I) dim in the kernel.
    Call once when weights are loaded, NOT per forward call.
    """
    E, N, K = w1.shape
    I = N // 2
    assert w2.shape == (E, K, I)
    assert I % tn == 0 or tn == I
    num_i_tiles = max(I // tn, 1)
    w1g = jnp.transpose(w1[:, :I, :], (0, 2, 1)).reshape(E, K, num_i_tiles, tn)
    w1u = jnp.transpose(w1[:, I:, :], (0, 2, 1)).reshape(E, K, num_i_tiles, tn)
    w1gu = jnp.concatenate([w1g, w1u], axis=-1).reshape(E, K, 2 * I)
    w2t = jnp.transpose(w2, (0, 2, 1))                  # (E, I, K)
    return w1gu, w2t


# --------------------------------------------------------------------------
# Forward
# --------------------------------------------------------------------------
def fused_moe(hidden_states, w1gu, w2t, topk_weights, topk_ids, *,
              tn, tm=None, vmem_budget=None, vmem_limit_bytes=None,
              max_experts_per_tile=None):
    """hidden_states (M,K); w1gu/w2t from prepare_moe_weights; topk_* (M,topk)."""
    M, K = hidden_states.shape
    E, I, K_w2 = w2t.shape
    assert K_w2 == K and w1gu.shape == (E, K, 2 * I)
    topk = topk_ids.shape[1]
    out_dtype = hidden_states.dtype

    assert K % 128 == 0, "hidden size K must be a multiple of 128"
    assert (tn % 128 == 0 or tn == I) and I % tn == 0
    num_i_tiles = I // tn

    capacity = _vmem_capacity_bytes()
    if vmem_budget is None:
        vmem_budget = int(0.75 * capacity)
    if tm is None:
        tm = _select_tm(M, K, tn, vmem_budget)
    if vmem_limit_bytes is None:
        vmem_limit_bytes = int(min(capacity,
                                   max(vmem_budget,
                                       _vmem_footprint_bytes(tm, tn, K) + (4 << 20))))

    M_pad = _round_up(M, tm)
    num_m_tiles = M_pad // tm

    a = hidden_states
    if M_pad != M:
        a = jnp.pad(a, ((0, M_pad - M), (0, 0)))

    # ---- routing preprocessing (scatter-based; no (M, topk, E) one-hot) ----
    ids = topk_ids.astype(jnp.int32)
    tw = topk_weights.astype(jnp.float32)
    rows = jnp.arange(M, dtype=jnp.int32)[:, None]
    rw = jnp.zeros((M_pad, E), jnp.float32).at[rows, ids].add(tw)     # (M_pad, E)
    routing_w = jnp.transpose(rw, (1, 0))[:, :, None]                 # (E, M_pad, 1)

    tile_of_tok = (jnp.arange(M, dtype=jnp.int32) // tm)[:, None]
    present = jnp.zeros((num_m_tiles, E), jnp.bool_).at[tile_of_tok, ids].set(True)
    num_active = jnp.sum(present, axis=-1).astype(jnp.int32)          # (tiles,)

    n_slots = int(min(E, tm * topk))                  # max distinct experts/tile
    if max_experts_per_tile is not None:
        n_slots = int(min(n_slots, max(1, int(max_experts_per_tile))))
    e_idx = jnp.arange(E, dtype=jnp.int32)
    sort_key = jnp.where(present, e_idx[None, :], E + e_idx[None, :])
    order = jnp.argsort(sort_key, axis=-1).astype(jnp.int32)          # actives first
    slot_pos = jnp.minimum(jnp.arange(n_slots, dtype=jnp.int32)[None, :],
                           jnp.maximum(num_active[:, None] - 1, 0))
    active_expert = jnp.take_along_axis(order, slot_pos, axis=-1)     # (tiles, slots)

    # Expert-slot axis MUST be innermost for the no-DMA skip of clamped slots.
    grid = (num_m_tiles, num_i_tiles, n_slots)

    kernel = functools.partial(_moe_kernel, tn=tn)

    out = pl.pallas_call(
        kernel,
        out_shape=jax.ShapeDtypeStruct((M_pad, K), out_dtype),
        grid_spec=pltpu.PrefetchScalarGridSpec(
            num_scalar_prefetch=2,
            grid=grid,
            in_specs=[
                # activations: resident per M-tile
                pl.BlockSpec((tm, K), lambda i, j, s, na, ae: (i, 0)),
                # merged gate|up w1 (E, K, 2*I), tile-interleaved per tn
                pl.BlockSpec((1, K, 2 * tn), lambda i, j, s, na, ae: (ae[i, s], 0, j)),
                # w2 transposed (E, I, K)
                pl.BlockSpec((1, tn, K), lambda i, j, s, na, ae: (ae[i, s], j, 0)),
                # routing weights (E, M_pad, 1)
                pl.BlockSpec((1, tm, 1), lambda i, j, s, na, ae: (ae[i, s], i, 0)),
            ],
            out_specs=pl.BlockSpec((tm, K), lambda i, j, s, na, ae: (i, 0)),
            scratch_shapes=[pltpu.VMEM((tm, K), jnp.float32)],
        ),
        compiler_params=pltpu.CompilerParams(
            dimension_semantics=("parallel", "arbitrary", "arbitrary"),
            vmem_limit_bytes=int(vmem_limit_bytes),
        ),
    )(num_active, active_expert, a, w1gu, w2t, routing_w)

    return out[:M]


# --------------------------------------------------------------------------
# Pure-JAX reference (module semantics, f32 accumulation)
# --------------------------------------------------------------------------
def _reference_moe(a, w1, w2, tw, tids):
    E, N, K = w1.shape
    M = a.shape[0]
    half = N // 2
    h1 = jnp.einsum("mk,enk->emn", a, w1, preferred_element_type=jnp.float32)
    act = jax.nn.silu(h1[..., :half]) * h1[..., half:]
    act = act.astype(w2.dtype)          # mimic the MXU input dtype of GEMM2
    h2 = jnp.einsum("emn,ekn->emk", act, w2, preferred_element_type=jnp.float32)
    out = jnp.zeros((M, K), jnp.float32)
    for t in range(tids.shape[1]):
        out = out + tw[:, t:t + 1] * h2[tids[:, t], jnp.arange(M)]
    return out


if __name__ == "__main__":
    # Small aligned problem consistent with the MoE forward:
    # M tokens, hidden K, intermediate I (N = 2*I gate+up), E experts, topk.
    M, K, I, E, TOPK = 32, 128, 256, 8, 2
    N = 2 * I

    key = jax.random.PRNGKey(0)
    k1, k2, k3, k4, k5 = jax.random.split(key, 5)

    hidden_states = jax.random.normal(k1, (M, K), dtype=jnp.float32).astype(jnp.bfloat16)
    w1 = (jax.random.normal(k2, (E, N, K), dtype=jnp.float32) * 0.1).astype(jnp.bfloat16)
    w2 = (jax.random.normal(k3, (E, K, I), dtype=jnp.float32) * 0.1).astype(jnp.bfloat16)
    topk_ids = jax.random.randint(k4, (M, TOPK), 0, E, dtype=jnp.int32)
    logits = jax.random.normal(k5, (M, TOPK), dtype=jnp.float32)
    topk_weights = jax.nn.softmax(logits, axis=-1)

    # One-time, weight-load-time preprocessing (hoisted off the per-call path).
    tn, vmem_budget, vmem_limit = select_moe_tiles(K, I)
    w1gu, w2t = prepare_moe_weights(w1, w2, tn)
    w1gu, w2t = jax.block_until_ready((w1gu, w2t))

    # Forward.
    out = fused_moe(hidden_states, w1gu, w2t, topk_weights, topk_ids,
                    tn=tn, vmem_budget=vmem_budget, vmem_limit_bytes=vmem_limit)
    out = jax.block_until_ready(out)

    ref = _reference_moe(hidden_states, w1, w2, topk_weights, topk_ids)
    err = jnp.max(jnp.abs(out.astype(jnp.float32) - ref))
    assert err < 5e-2, f"max abs err = {err}"

    print("KERNEL_OK")
</pallas_src>

<mosaic_0001>
module attributes {stable_mosaic.version = 11 : i64} {
  func.func @_moe_kernel(%arg0: i32, %arg1: i32, %arg2: i32, %arg3: memref<1xi32, #tpu.memory_space<smem>>, %arg4: memref<1x8xi32, #tpu.memory_space<smem>>, %arg5: memref<32x128xbf16, #tpu.memory_space<vmem>>, %arg6: memref<1x128x512xbf16, #tpu.memory_space<vmem>>, %arg7: memref<1x256x128xbf16, #tpu.memory_space<vmem>>, %arg8: memref<1x32x1xf32, #tpu.memory_space<vmem>>, %arg9: memref<32x128xbf16, #tpu.memory_space<vmem>>, %arg10: memref<32x128xf32, #tpu.memory_space<vmem>>) attributes {dimension_semantics = [#tpu.dimension_semantics<parallel>, #tpu.dimension_semantics<arbitrary>, #tpu.dimension_semantics<arbitrary>], iteration_bounds = array<i64: 1, 1, 8>, scalar_prefetch = 2 : i64, scratch_operands = 1 : i64, tpu.core_type = #tpu.core_type<tc>, window_params = [{transform_indices = @transform_0, window_bounds = array<i64: 32, 128>}, {transform_indices = @transform_1, window_bounds = array<i64: 1, 128, 512>}, {transform_indices = @transform_2, window_bounds = array<i64: 1, 256, 128>}, {transform_indices = @transform_3, window_bounds = array<i64: 1, 32, 1>}, {transform_indices = @transform_4, window_bounds = array<i64: 32, 128>}]} {
    %c0_i32 = arith.constant 0 : i32
    %0 = arith.cmpi eq, %arg1, %c0_i32 : i32
    %c0_i32_0 = arith.constant 0 : i32
    %1 = arith.cmpi eq, %arg2, %c0_i32_0 : i32
    %2 = arith.andi %0, %1 : i1
    %3 = arith.extui %2 : i1 to i32
    %c0_i32_1 = arith.constant 0 : i32
    %4 = arith.cmpi ne, %3, %c0_i32_1 : i32
    scf.if %4 {
      %cst = arith.constant 0.000000e+00 : f32
      %15 = vector.broadcast %cst : f32 to vector<32x128xf32>
      %c0 = arith.constant 0 : index
      %c0_5 = arith.constant 0 : index
      %16 = vector.load %arg10[%c0, %c0_5] : memref<32x128xf32, #tpu.memory_space<vmem>>, vector<32x128xf32>
      tpu.vector_store %arg10[%c0, %c0_5], %15 {strides = array<i32>} : memref<32x128xf32, #tpu.memory_space<vmem>>, vector<32x128xf32>,
    } else {
    }
    %5 = arith.index_cast %arg0 : i32 to index
    %6 = memref.load %arg3[%5] : memref<1xi32, #tpu.memory_space<smem>>
    %7 = arith.cmpi slt, %arg2, %6 : i32
    %8 = arith.extui %7 : i1 to i32
    %c0_i32_2 = arith.constant 0 : i32
    %9 = arith.cmpi ne, %8, %c0_i32_2 : i32
    scf.if %9 {
      %c0 = arith.constant 0 : index
      %c0_5 = arith.constant 0 : index
      %15 = vector.load %arg5[%c0, %c0_5] : memref<32x128xbf16, #tpu.memory_space<vmem>>, vector<32x128xbf16>
      %c0_6 = arith.constant 0 : index
      %c0_7 = arith.constant 0 : index
      %c0_8 = arith.constant 0 : index
      %16 = vector.load %arg6[%c0_6, %c0_7, %c0_8] : memref<1x128x512xbf16, #tpu.memory_space<vmem>>, vector<1x128x512xbf16>
      %17 = vector.shape_cast %16 : vector<1x128x512xbf16> to vector<128x512xbf16>
      %cst = arith.constant dense<0.000000e+00> : vector<32x512xf32>
      %18 = tpu.matmul %15, %17, %cst {dimension_numbers = #tpu.dot_dimension_numbers<[1], [0], [0], [1], [0, 0, 1, 1], [], []>} : vector<32x128xbf16>, vector<128x512xbf16>, vector<32x512xf32> -> vector<32x512xf32>
      %19 = vector.extract_strided_slice %18 {offsets = [0, 0], sizes = [32, 256], strides = [1, 1]} : vector<32x512xf32> to vector<32x256xf32>
      %20 = vector.extract_strided_slice %18 {offsets = [0, 256], sizes = [32, 256], strides = [1, 1]} : vector<32x512xf32> to vector<32x256xf32>
      %21 = arith.negf %19 : vector<32x256xf32>
      %22 = math.exp %21 : vector<32x256xf32>
      %cst_9 = arith.constant 1.000000e+00 : f32
      %23 = vector.broadcast %cst_9 : f32 to vector<32x256xf32>
      %24 = arith.addf %23, %22 : vector<32x256xf32>
      %25 = arith.divf %23, %24 : vector<32x256xf32>
      %26 = arith.mulf %19, %25 : vector<32x256xf32>
      %27 = arith.mulf %26, %20 : vector<32x256xf32>
      %c0_10 = arith.constant 0 : index
      %c0_11 = arith.constant 0 : index
      %c0_12 = arith.constant 0 : index
      %28 = vector.load %arg8[%c0_10, %c0_11, %c0_12] : memref<1x32x1xf32, #tpu.memory_space<vmem>>, vector<1x32x1xf32>
      %29 = vector.shape_cast %28 : vector<1x32x1xf32> to vector<32x1xf32>
      %30 = vector.broadcast %29 : vector<32x1xf32> to vector<32x256xf32>
      %31 = arith.mulf %27, %30 : vector<32x256xf32>
      %32 = arith.truncf %31 : vector<32x256xf32> to vector<32x256xbf16>
      %c0_13 = arith.constant 0 : index
      %c0_14 = arith.constant 0 : index
      %c0_15 = arith.constant 0 : index
      %33 = vector.load %arg7[%c0_13, %c0_14, %c0_15] : memref<1x256x128xbf16, #tpu.memory_space<vmem>>, vector<1x256x128xbf16>
      %34 = vector.shape_cast %33 : vector<1x256x128xbf16> to vector<256x128xbf16>
      %cst_16 = arith.constant dense<0.000000e+00> : vector<32x128xf32>
      %35 = tpu.matmul %32, %34, %cst_16 {dimension_numbers = #tpu.dot_dimension_numbers<[1], [0], [0], [1], [0, 0, 1, 1], [], []>} : vector<32x256xbf16>, vector<256x128xbf16>, vector<32x128xf32> -> vector<32x128xf32>
      %c0_17 = arith.constant 0 : index
      %c0_18 = arith.constant 0 : index
      %36 = vector.load %arg10[%c0_17, %c0_18] : memref<32x128xf32, #tpu.memory_space<vmem>>, vector<32x128xf32>
      %37 = arith.addf %36, %35 : vector<32x128xf32>
      %c0_19 = arith.constant 0 : index
      %c0_20 = arith.constant 0 : index
      %38 = vector.load %arg10[%c0_19, %c0_20] : memref<32x128xf32, #tpu.memory_space<vmem>>, vector<32x128xf32>
      tpu.vector_store %arg10[%c0_19, %c0_20], %37 {strides = array<i32>} : memref<32x128xf32, #tpu.memory_space<vmem>>, vector<32x128xf32>,
    } else {
    }
    %c0_i32_3 = arith.constant 0 : i32
    %10 = arith.cmpi eq, %arg1, %c0_i32_3 : i32
    %c7_i32 = arith.constant 7 : i32
    %11 = arith.cmpi eq, %arg2, %c7_i32 : i32
    %12 = arith.andi %10, %11 : i1
    %13 = arith.extui %12 : i1 to i32
    %c0_i32_4 = arith.constant 0 : i32
    %14 = arith.cmpi ne, %13, %c0_i32_4 : i32
    scf.if %14 {
      %c0 = arith.constant 0 : index
      %c0_5 = arith.constant 0 : index
      %15 = vector.load %arg10[%c0, %c0_5] : memref<32x128xf32, #tpu.memory_space<vmem>>, vector<32x128xf32>
      %16 = arith.truncf %15 : vector<32x128xf32> to vector<32x128xbf16>
      %c0_6 = arith.constant 0 : index
      %c0_7 = arith.constant 0 : index
      %17 = vector.load %arg9[%c0_6, %c0_7] : memref<32x128xbf16, #tpu.memory_space<vmem>>, vector<32x128xbf16>
      tpu.vector_store %arg9[%c0_6, %c0_7], %16 {strides = array<i32>} : memref<32x128xbf16, #tpu.memory_space<vmem>>, vector<32x128xbf16>,
    } else {
    }
    return
  }
  func.func @transform_0(%arg0: i32, %arg1: i32, %arg2: i32, %arg3: memref<1xi32, #tpu.memory_space<smem>>, %arg4: memref<1x8xi32, #tpu.memory_space<smem>>) -> (i32, i32) {
    %c0_i32 = arith.constant 0 : i32
    %c0_i32_0 = arith.constant 0 : i32
    return %arg0, %c0_i32 : i32, i32
  }
  func.func @transform_1(%arg0: i32, %arg1: i32, %arg2: i32, %arg3: memref<1xi32, #tpu.memory_space<smem>>, %arg4: memref<1x8xi32, #tpu.memory_space<smem>>) -> (i32, i32, i32) {
    %0 = arith.index_cast %arg0 : i32 to index
    %1 = arith.index_cast %arg2 : i32 to index
    %2 = memref.load %arg4[%0, %1] : memref<1x8xi32, #tpu.memory_space<smem>>
    %c0_i32 = arith.constant 0 : i32
    %c0_i32_0 = arith.constant 0 : i32
    return %2, %c0_i32, %arg1 : i32, i32, i32
  }
  func.func @transform_2(%arg0: i32, %arg1: i32, %arg2: i32, %arg3: memref<1xi32, #tpu.memory_space<smem>>, %arg4: memref<1x8xi32, #tpu.memory_space<smem>>) -> (i32, i32, i32) {
    %0 = arith.index_cast %arg0 : i32 to index
    %1 = arith.index_cast %arg2 : i32 to index
    %2 = memref.load %arg4[%0, %1] : memref<1x8xi32, #tpu.memory_space<smem>>
    %c0_i32 = arith.constant 0 : i32
    %c0_i32_0 = arith.constant 0 : i32
    return %2, %arg1, %c0_i32 : i32, i32, i32
  }
  func.func @transform_3(%arg0: i32, %arg1: i32, %arg2: i32, %arg3: memref<1xi32, #tpu.memory_space<smem>>, %arg4: memref<1x8xi32, #tpu.memory_space<smem>>) -> (i32, i32, i32) {
    %0 = arith.index_cast %arg0 : i32 to index
    %1 = arith.index_cast %arg2 : i32 to index
    %2 = memref.load %arg4[%0, %1] : memref<1x8xi32, #tpu.memory_space<smem>>
    %c0_i32 = arith.constant 0 : i32
    %c0_i32_0 = arith.constant 0 : i32
    return %2, %arg0, %c0_i32 : i32, i32, i32
  }
  func.func @transform_4(%arg0: i32, %arg1: i32, %arg2: i32, %arg3: memref<1xi32, #tpu.memory_space<smem>>, %arg4: memref<1x8xi32, #tpu.memory_space<smem>>) -> (i32, i32) {
    %c0_i32 = arith.constant 0 : i32
    %c0_i32_0 = arith.constant 0 : i32
    return %arg0, %c0_i32 : i32, i32
  }
}

</mosaic_0001>

<bundles_post_ra>
// kernel: tpu_custom_call.1
= control target key start
LH: loop header
LB: loop body
LE: loop exit
PB: predicated region body
PF: predicated region fallthrough
CT: control target
= control target key end

     0   :  { %s2229_s0 = inlined_call_operand.<no memory space> [shape: s32[1], index: 0, kind: input, shape index: {}]   ;;  %s2230_s1 = inlined_call_operand.vmem [shape: s32[1,8], index: 1, kind: input, shape index: {}]   ;;  %s2231_s2 = inlined_call_operand.vmem [shape: bf16[32,128], index: 2, kind: input, shape index: {}]   ;;  %s2232_s3 = inlined_call_operand.hbm [shape: bf16[8,128,512], index: 3, kind: input, shape index: {}]   ;;  %s2233_s4 = inlined_call_operand.hbm [shape: bf16[8,256,128], index: 4, kind: input, shape index: {}]   ;;  %s2234_s5 = inlined_call_operand.vmem [shape: f32[8,32,1], index: 5, kind: input, shape index: {}]   ;;  %s2235_s6 = inlined_call_operand.hbm [shape: bf16[32,128], index: 6, kind: output, shape index: {}]  }
   0x1   :  { %2242 = sst [smem:[#allocation22_spill]] %s2232_s3  ;;  %s12_s25 = sshll.u32 %s2230_s1, 4  ;;  %s13_s25 = int_to_ptr.vmem [resolvable:$true] %s12_s25 }
   0x2   :  { %11 = sst [smem:[#allocation4]] %s2229_s0  ;;  %s1617_s26 = scalar_lea.vmem %s13_s25, 16 }
   0x3   :  { %p1618_p0 = scmp.ne.s32.totalorder %s13_s25, %s1617_s26  ;;  %p1622_p1 = scmp.lt.s32.totalorder %s13_s25, %s13_s25 }
   0x4   :  { %p1623_p2 = scmp.lt.s32.totalorder %s1617_s26, %s1617_s26 }
   0x6   :  { %p1624_p3 = por %p1623_p2, %p1622_p1 }
   0x8   :  { %p1625_p4 = pnand %p1624_p3, %p1618_p0 }
   0xa   :  { %1628 = shalt.err (!%p1625_p4)  }
   0xb   :  { %s1801_s27 = smov [#allocation5]  }
   0xc   :  { %15 = dma.vmem_to_smem %s13_s25, 16, %s1801_s27, [#allocation3] }
   0xd   :  { %1751 = dma.done.wait [#allocation3], 16 }
   0xe   :  { %1752 = vsyncadd [#allocation3], 4294967280 }
   0xf   :  { %17 = sfence }
  0x10   :  { %18 = vsyncpa [#allocation7], 0 }
  0x11   :  { %20 = vsyncpa [#allocation7 + $0x1], 0 }
  0x12   :  { %21 = vsyncpa [#allocation10], 0 }
  0x13   :  { %23 = vsyncpa [#allocation10 + $0x1], 0 }
  0x14   :  { %24 = vsyncpa [#allocation8], 0  ;;  %s1854_s0 = smov 0   ;;  %s1856_s1 = smov 0  }
  0x15   :  { %s1858_s28 = smov 0   ;;  %s1860_s29 = smov 0  }
  0x16   :  { %s1862_s30 = smov 0   ;;  %s1864_s7 = smov 0  }
  0x17   :  { %s1866_s8 = smov 0   ;;  %s1868_s9 = smov 0  }
  0x18   :  { %s1870_s10 = smov 0  }
  0x19 LB: > { %2243 = sst [smem:[#allocation20_spill]] %s1795_s9  ;;  %s2236_s11 = sadd.s32 4294967295, %s1799_s10   ;;  %s1799_s10 = sphi %s1870_s10, %s30_s10   ;;  %s1795_s9 = sphi %s1868_s9, %s2262_s9   ;;  %s1791_s8 = sphi %s1866_s8, %s2261_s8   ;;  %s1787_s7 = sphi %s1864_s7, %s2268_s7   ;;  %s1783_s30 = sphi %s1862_s30, %s2267_s30   ;;  %s1779_s29 = sphi %s1860_s29, %s2266_s29   ;;  %s1775_s28 = sphi %s1858_s28, %s2265_s28   ;;  %s1771_s1 = sphi %s1856_s1, %s2264_s1   ;;  %s1767_s0 = sphi %s1854_s0, %s2263_s0  }
  0x1a   : > { %s42_s12 = sadd.s32 1, %s1795_s9  ;;  %s79_s13 = sshra.s32 %s1795_s9, 7 }
  0x1b   : > { %p43_p5 = scmp.ge.s32.totalorder %s42_s12, 8  ;;  %s1253_s14 = sshll.u32 %s79_s13, 7 }
  0x1c   : > { %s84_s15 = sand.u32 127, %s1795_s9  ;;  %s100_s17 = sadd.s32 1, %s1787_s7 }
  0x1d   : > { %s2270_s12 = smov (%p43_p5, %s42_s12), 0  ;;  %s1903_s16 = sadd.s32 %s1253_s14, %s84_s15 }
  0x1e   : > { %2244 = sst [smem:[#allocation21_spill]] %s2270_s12  ;;  %s87_s19 = sshra.s32 %s2270_s12, 7 }
  0x1f   : > { %s86_s18 = sld [smem:[#allocation5 + %s1903_s16]]  ;;  %s1254_s20 = sshll.u32 %s87_s19, 7 }
  0x20   : > { %s92_s21 = sand.u32 127, %s2270_s12  ;;  %p107_p6 = scmp.ne.s32.totalorder %s1787_s7, %s1783_s30 }
  0x21   : > { %s1909_s22 = sadd.s32 %s1254_s20, %s92_s21  ;;  %p2240_p7 = scmp.eq.s32.totalorder %s1799_s10, 0 }
  0x22   : > { %s94_s23 = sld [smem:[#allocation5 + %s1909_s22]]  ;;  %p113_p8 = scmp.ne.s32.totalorder %s1783_s30, %s1779_s29 }
  0x23   : > { %p1918_p9 = scmp.eq.s32.totalorder %s2236_s11, 0  ;;  %p1924_p10 = por %p2240_p7, %p107_p6 }
  0x24   : > { %s1929_s26 = sld [smem:[#allocation5 + %s1903_s16]]  ;;  %p2239_p12 = scmp.lt.s32.totalorder %s1799_s10, 8 }
  0x25   : > { %p1933_p11 = por %p1918_p9, %p113_p8  ;;  %s260_s29 = sand.u32 1, %s1787_s7  }
  0x26   : > { %s1262_s13 = sshll.u32 %s260_s29, 8  ;;  %p1957_p0 = pnand %p2239_p12, %p1924_p10 }
  0x27   : > { %s2247_s27 = scalar_select %p1933_p11, 1, 0 }
  0x28   : > { %s95_s14 = ssub.s32 %s86_s18, %s94_s23  ;;  %s264_s15 = scalar_lea.vmem [#allocation6], %s1262_s13 }
  0x29   : > { %p98_p13 = scmp.eq.s32.totalorder %s95_s14, 0  ;;  %s281_s19 = sshll.u32 %s264_s15, 4  ;;  %s1951_s19 = int_to_ptr.vmem [resolvable:$true] %s281_s19 }
  0x2a   : > { %s1409_s20 = scalar_select %p1924_p10, [#allocation5], [#allocation12] }
  0x2b   : > { %s1942_s21 = scalar_select %p98_p13, %s1787_s7, %s100_s17  }
  0x2c   : > { %s1410_s11 = scalar_select %p1924_p10, %s1903_s16, 0 }
  0x2d   : > { %s2272_s20 = smov (!%p2239_p12, %s1409_s20), [#allocation14]  ;;  %p1270_p1 = scmp.ge.s32.totalorder %s1799_s10, 1 }
  0x2e   : > { %s2274_s11 = smov (!%p2239_p12, %s1410_s11), 0  ;;  %p349_p2 = scmp.lt.s32.totalorder %s1799_s10, 9 }
  0x2f   : > { %s272_s23 = sld [smem:[%s2272_s20 + %s2274_s11]]  ;;  %s1975_s9 = scalar_lea.sflag [#allocation7], %s260_s29 }
  0x30   : > { %p1963_p3 = pnand %p1270_p1, %p349_p2  ;;  %s2250_s3 = sld [smem:[#allocation22_spill]] }
  0x31   : > { %s1973_s25 = sld [smem:[#allocation5 + %s1909_s22]]  ;;  %p1631_p5 = pneg %p1957_p0 }
  0x32   : > { %s2249_s17 = scalar_select %p1963_p3, 1, 0 }
  0x35   : > { %s1345_s13 = sshll.u32 %s272_s23, 12 }
  0x36   : > { %s1970_s12 = scalar_lea.hbm %s2250_s3, %s1345_s13  ;;  %s1634_s13 = scalar_lea.hbm %s2250_s3, 32768 }
  0x37   : > { %s1629_s11 = scalar_lea.hbm %s1970_s12, 4096  ;;  %p1635_p10 = scmp.lt.u32.totalorder %s1970_s12, %s2250_s3 }
  0x38   : > { %p1630_p4 = scmp.ne.s32.totalorder %s1970_s12, %s1629_s11  ;;  %p1636_p13 = scmp.lt.u32.totalorder %s1634_s13, %s1629_s11 }
  0x39   : > { %p1638_p2 = scmp.lt.u32.totalorder %s1629_s11, %s1970_s12 }
  0x3a   : > { %p1632_p6 = pnand %p1631_p5, %p1630_p4  ;;  %p1637_p1 = por %p1636_p13, %p1635_p10 }
  0x3c   : > { %p1633_p8 = pneg %p1632_p6  ;;  %p1639_p12 = por %p1638_p2, %p1637_p1 }
  0x3e   : > { %p1640_p7 = pnand %p1639_p12, %p1633_p8 }
  0x40   : > { %1643 = shalt.err (!%p1640_p7)
}
  0x41   : > { %s1644_s22 = scalar_lea.vmem %s1951_s19, 4096  ;;  %s1802_s29 = smov [#allocation6]  }
  0x42   : > { %p1645_p4 = scmp.ne.s32.totalorder %s1951_s19, %s1644_s22  ;;  %s1649_s20 = sshll.u32 %s1802_s29, 4  ;;  %s1650_s20 = int_to_ptr.vmem [resolvable:$false] %s1649_s20 }
  0x43   : > { %s1651_s23 = scalar_lea.vmem %s1650_s20, 8192  ;;  %p1652_p3 = scmp.lt.s32.totalorder %s1951_s19, %s1650_s20 }
  0x44   : > { %p1647_p6 = pnand %p1645_p4, %p1631_p5  ;;  %p1653_p10 = scmp.lt.s32.totalorder %s1651_s23, %s1644_s22 }
  0x46   : > { %p1648_p11 = pneg %p1647_p6  ;;  %p1654_p13 = por %p1653_p10, %p1652_p3 }
  0x48   : > { %p1655_p1 = pnand %p1654_p13, %p1648_p11 }
  0x4a   : > { %1658 = shalt.err (!%p1655_p1)
}
  0x4b   : > { %s1803_s11 = smov 256   ;;  %s1804_s13 = smov 16  }
  0x4c   : > { %1426 = dma.hbm_to_vmem [thread:$0]  (!%p1957_p0), %s1970_s12, 4096, %s1951_s19, %s1975_s9, %s1803_s11, %s1803_s11, %s1804_s13  }
  0x4d   : > { %p151_p7 = scmp.ne.s32.totalorder %s1775_s28, %s1771_s1  ;;  %p157_p11 = scmp.ne.s32.totalorder %s1771_s1, %s1767_s0 }
  0x4e   : > { %s291_s14 = sand.u32 1, %s1775_s28   ;;  %p2251_p12 = scmp.eq.s32.totalorder %s1799_s10, 0 }
  0x4f   : > { %p2012_p5 = por %p157_p11, %p1918_p9  ;;  %s1266_s22 = sshll.u32 %s291_s14, 7 }
  0x50   : > { %p153_p3 = por %p151_p7, %p2251_p12  ;;  %s139_s29 = ssub.s32 %s1929_s26, %s1973_s25 }
  0x51   : > { %s144_s20 = sadd.s32 1, %s1775_s28  ;;  %p142_p8 = scmp.eq.s32.totalorder %s139_s29, 0 }
  0x52   : > { %s1412_s23 = scalar_select %p153_p3, [#allocation5], [#allocation13] }
  0x53   : > { %s2020_s3 = scalar_select %p142_p8, %s1775_s28, %s144_s20  }
  0x54   : > { %s2276_s16 = smov (!%p153_p3, %s1903_s16), 0  ;;  %p2253_p2 = scmp.lt.s32.totalorder %s1799_s10, 8 }
  0x55   : > { %s295_s12 = scalar_lea.vmem [#allocation9], %s1266_s22  ;;  %s2040_s11 = scalar_lea.sflag [#allocation10], %s291_s14 }
  0x56   : > { %s2278_s23 = smov (!%p2253_p2, %s1412_s23), [#allocation15]  ;;  %p2254_p0 = pmov %p2253_p2 }
  0x57   : > { %s312_s24 = sshll.u32 %s295_s12, 4  ;;  %s1664_s29 = scalar_lea.hbm %s2233_s4, 16384  ;;  %s2033_s24 = int_to_ptr.vmem [resolvable:$true] %s312_s24 }
  0x58   : > { %s2280_s16 = smov (!%p2254_p0, %s2276_s16), 0  ;;  %p2255_p4 = pmov %p2254_p0 }
  0x59   : > { %s303_s9 = sld [smem:[%s2278_s23 + %s2280_s16]] }
  0x5a   : > { %p2029_p6 = pnand %p2255_p4, %p153_p3 }
  0x5c   : > { %p1661_p10 = pneg %p2029_p6 }
  0x5f   : > { %s1346_s26 = sshll.u32 %s303_s9, 11 }
  0x60   : > { %s2038_s25 = scalar_lea.hbm %s2233_s4, %s1346_s26 }
  0x61   : > { %s1659_s13 = scalar_lea.hbm %s2038_s25, 2048  ;;  %p1665_p7 = scmp.lt.u32.totalorder %s2038_s25, %s2233_s4 }
  0x62   : > { %p1660_p9 = scmp.ne.s32.totalorder %s2038_s25, %s1659_s13  ;;  %p1666_p11 = scmp.lt.u32.totalorder %s1664_s29, %s1659_s13 }
  0x63   : > { %p1668_p3 = scmp.lt.u32.totalorder %s1659_s13, %s2038_s25 }
  0x64   : > { %p1662_p13 = pnand %p1661_p10, %p1660_p9  ;;  %p1667_p12 = por %p1666_p11, %p1665_p7 }
  0x66   : > { %p1663_p1 = pneg %p1662_p13  ;;  %p1669_p8 = por %p1668_p3, %p1667_p12 }
  0x68   : > { %p1670_p2 = pnand %p1669_p8, %p1663_p1 }
  0x6a   : > { %1673 = shalt.err (!%p1670_p2)
}
  0x6b   : > { %s1674_s14 = scalar_lea.vmem %s2033_s24, 2048  ;;  %s1805_s9 = smov [#allocation9]  }
  0x6c   : > { %p1675_p0 = scmp.ne.s32.totalorder %s2033_s24, %s1674_s14  ;;  %s1679_s12 = sshll.u32 %s1805_s9, 4  ;;  %s1680_s12 = int_to_ptr.vmem [resolvable:$false] %s1679_s12 }
  0x6d   : > { %s1681_s26 = scalar_lea.vmem %s1680_s12, 4096  ;;  %p1682_p13 = scmp.lt.s32.totalorder %s2033_s24, %s1680_s12 }
  0x6e   : > { %p1677_p4 = pnand %p1675_p0, %p1661_p10  ;;  %p1683_p7 = scmp.lt.s32.totalorder %s1681_s26, %s1674_s14 }
  0x70   : > { %p1678_p9 = pneg %p1677_p4  ;;  %p1684_p11 = por %p1683_p7, %p1682_p13 }
  0x72   : > { %p1685_p12 = pnand %p1684_p11, %p1678_p9 }
  0x74   : > { %1688 = shalt.err (!%p1685_p12)
}
  0x75   : > { %s1806_s19 = smov 64   ;;  %s1807_s18 = smov 4  }
  0x76   : > { %1431 = dma.hbm_to_vmem [thread:$0]  (!%p2029_p6), %s2038_s25, 2048, %s2033_s24, %s2040_s11, %s1806_s19, %s1806_s19, %s1807_s18  }
  0x77   : > { %p2257_p10 = scmp.ne.s32.totalorder %s2249_s17, 0 }
  0x78   : > { %s355_s13 = sand.u32 (!%p2257_p10), 1, %s1783_s30   ;;  %p2258_p1 = scmp.ne.s32.totalorder (!%p2257_p10), %s2247_s27, 0 }
  0x79   : > { %353 = sbr.rel (%p2257_p10) target bundleno = 702 (0x2be), region = 36  ;;  %s1271_s16 = sshll.u32 (!%p2257_p10), %s355_s13, 8 }
  0x7a   : > { %s356_s22 = scalar_lea.sflag (!%p2257_p10), [#allocation7], %s355_s13  ;;  %s2071_s29 = scalar_lea.vmem (!%p2257_p10), [#allocation6], %s1271_s16 }
  0x80   : > { %1754 = dma.done.wait (%p2258_p1), %s356_s22, 4096  }
  0x81   : > { %1756 = vsyncadd (%p2258_p1), %s356_s22, 4294963200  ;;  %s364_s20 = sand.u32 1, %s1771_s1  }
  0x82   : > { %s1272_s0 = sshll.u32 %s364_s20, 7  ;;  %s365_s24 = scalar_lea.sflag [#allocation10], %s364_s20 }
  0x83   : > { %s2078_s25 = scalar_lea.vmem [#allocation9], %s1272_s0 }
  0x84   : > { %1758 = dma.done.wait (%p2012_p5), %s365_s24, 2048  }
  0x85   : > { %1760 = vsyncadd (%p2012_p5), %s365_s24, 4294965248  ;;  %s439_s17 = sshra.s32 %s1791_s8, 7  ;;  %s444_s11 = sand.u32 127, %s1791_s8 }
  0x86   : > { %s1273_s23 = sshll.u32 %s439_s17, 7  ;;  %p468_p6 = scmp.eq.s32.totalorder %s1791_s8, 0 }
  0x87   : > { %s445_s27 = sadd.s32 %s1273_s23, %s444_s11  ;;  %v1808_v0 = vmov (%p468_p6), 0.0  }
  0x88   : > { %s446_s14 = sld [smem:[#allocation5 + %s445_s27]]  ;;  %473 = vst [vmem:[#allocation2] sm:$0xff] (%p468_p6), %v1808_v0  ;;  %474 = vst [vmem:[#allocation2 + $0x8] sm:$0xff] (%p468_p6), %v1808_v0 }
  0x89   : > { %475 = vst [vmem:[#allocation2 + $0x10] sm:$0xff] (%p468_p6), %v1808_v0  ;;  %476 = vst [vmem:[#allocation2 + $0x18] sm:$0xff] (%p468_p6), %v1808_v0 }
  0x8c   : > { %472 = sbr.rel (!%p468_p6) target bundleno = 147 (0x93), region = 48 }
  0x8e   : > { %p448_p3 = scmp.lt.s32.totalorder %s446_s14, 7 }
  0x90   : > { %s2282_s14 = smov (!%p448_p3, %s446_s14), 7 }
  0x91   : > { %s1347_s9 = sshll.u32 %s2282_s14, 5 }
  0x92   : > { %s2090_s19 = scalar_lea.vmem %s2234_s5, %s1347_s9 }
  0x93 PF: > { %s477_s15 = sld [smem:[#allocation4]] }
  0x99   : > { %p1277_p5 = scmp.ge.s32.totalorder %s1791_s8, %s477_s15 }
  0x9a   : > { %v1519_v1 = vld [vmem:[%s2071_s29 + $0x4] ss:$16 sps:$4 sm:$0xff] (!%p1277_p5)   ;;  %v1521_v2 = vld [vmem:[%s2071_s29] ss:$16 sps:$4 sm:$0xff] (!%p1277_p5)   ;;  %v1809_v3 = vmov (!%p1277_p5), 0   ;;  %v861_v28 = vld [vmem:[%s2090_s19 + $0x8] sm:$0xff] (!%p1277_p5) }
  0x9b   : > { %481 = sbr.rel (%p1277_p5) target bundleno = 666 (0x29a), region = 52  ;;  %722 = vmatprep.mubr.bf16.mxu0 (!%p1277_p5), %v1809_v3  ;;  %775 = vmatprep.mubr.bf16.mxu1 (!%p1277_p5), %v1809_v3  ;;  %v1522_v4 = vld [vmem:[%s2071_s29 + $0x24] ss:$16 sps:$4 sm:$0xff] (!%p1277_p5)   ;;  %v1524_v5 = vld [vmem:[%s2071_s29 + $0x20] ss:$16 sps:$4 sm:$0xff] (!%p1277_p5)   ;;  %v863_v31 = vld [vmem:[%s2090_s19 + $0x18] sm:$0xff] (!%p1277_p5) }
  0x9c   : > { %690 = vmatprep.subr.bf16.mxu0 (!%p1277_p5), %v1519_v1  ;;  %1517 = vset.pattern.permute.xlu0 (!%p1277_p5), %v1809_v3  ;;  %v1525_v6 = vld [vmem:[%s2071_s29 + $0x44] ss:$16 sps:$4 sm:$0xff] (!%p1277_p5)   ;;  %v1527_v7 = vld [vmem:[%s2071_s29 + $0x40] ss:$16 sps:$4 sm:$0xff] (!%p1277_p5)   ;;  %v1540_v9 = vld [vmem:[%s2071_s29 + $0xc] ss:$16 sps:$4 sm:$0xff] (!%p1277_p5)  }
  0x9d   : > { %691 = vmatpush1.bf16.msra.mxu0 (!%p1277_p5), %v1521_v2  ;;  %1518 = vset.pattern.permute.xlu1 (!%p1277_p5), %v1809_v3  ;;  %v1528_v8 = vld [vmem:[%s2071_s29 + $0x64] ss:$16 sps:$4 sm:$0xff] (!%p1277_p5)   ;;  %v1542_v10 = vld [vmem:[%s2071_s29 + $0x8] ss:$16 sps:$4 sm:$0xff] (!%p1277_p5)   ;;  %v1530_v11 = vld [vmem:[%s2071_s29 + $0x60] ss:$16 sps:$4 sm:$0xff] (!%p1277_p5)  }
  0x9e   : > { %692 = vmatprep.subr.bf16.mxu0 (!%p1277_p5), %v1522_v4  ;;  %v1531_v12 = vld [vmem:[%s2071_s29 + $0x84] ss:$16 sps:$4 sm:$0xff] (!%p1277_p5)   ;;  %743 = vmatprep.subr.bf16.mxu1 (!%p1277_p5), %v1540_v9  ;;  %v1546_v13 = vld [vmem:[%s2071_s29 + $0x2c] ss:$16 sps:$4 sm:$0xff] (!%p1277_p5)   ;;  %v1548_v14 = vld [vmem:[%s2071_s29 + $0x28] ss:$16 sps:$4 sm:$0xff] (!%p1277_p5)  }
  0x9f   : > { %744 = vmatpush1.bf16.msra.mxu1 (!%p1277_p5), %v1542_v10  ;;  %v1533_v15 = vld [vmem:[%s2071_s29 + $0x80] ss:$16 sps:$4 sm:$0xff] (!%p1277_p5)   ;;  %v1550_v16 = vld [vmem:[%s2071_s29 + $0x4c] ss:$16 sps:$4 sm:$0xff] (!%p1277_p5)   ;;  %v1534_v17 = vld [vmem:[%s2071_s29 + $0xa4] ss:$16 sps:$4 sm:$0xff] (!%p1277_p5)  }
  0xa0   : > { %745 = vmatprep.subr.bf16.mxu1 (!%p1277_p5), %v1546_v13  ;;  %v1552_v18 = vld [vmem:[%s2071_s29 + $0x48] ss:$16 sps:$4 sm:$0xff] (!%p1277_p5)   ;;  %v1553_v19 = vld [vmem:[%s2071_s29 + $0x6c] ss:$16 sps:$4 sm:$0xff] (!%p1277_p5)   ;;  %v1536_v20 = vld [vmem:[%s2071_s29 + $0xa0] ss:$16 sps:$4 sm:$0xff] (!%p1277_p5)  }
  0xa1   : > { %693 = vmatpush1.bf16.msra.mxu0 (!%p1277_p5), %v1524_v5  ;;  %v1537_v21 = vld [vmem:[%s2071_s29 + $0xc4] ss:$16 sps:$4 sm:$0xff] (!%p1277_p5)   ;;  %v1539_v22 = vld [vmem:[%s2071_s29 + $0xc0] ss:$16 sps:$4 sm:$0xff] (!%p1277_p5)   ;;  %v1555_v23 = vld [vmem:[%s2071_s29 + $0x68] ss:$16 sps:$4 sm:$0xff] (!%p1277_p5)  }
  0xa2   : > { %694 = vmatprep.subr.bf16.mxu0 %v1525_v6  ;;  %v1543_v24 = vld [vmem:[%s2071_s29 + $0xe4] ss:$16 sps:$4 sm:$0xff]   ;;  %v1557_v25 = vld [vmem:[%s2071_s29 + $0x8c] ss:$16 sps:$4 sm:$0xff]   ;;  %v1559_v26 = vld [vmem:[%s2071_s29 + $0x88] ss:$16 sps:$4 sm:$0xff]  }
  0xa3   : > { %746 = vmatpush1.bf16.msra.mxu1 %v1548_v14  ;;  %v860_v27 = vld [vmem:[%s2090_s19] sm:$0xff]  ;;  %v1560_v29 = vld [vmem:[%s2071_s29 + $0xac] ss:$16 sps:$4 sm:$0xff]   ;;  %v862_v30 = vld [vmem:[%s2090_s19 + $0x10] sm:$0xff] }
  0xa4   : > { %747 = vmatprep.subr.bf16.mxu1 %v1550_v16  ;;  %866 = vperm.xlu0 %1517, %v860_v27   ;;  %v1545_v32 = vld [vmem:[%s2071_s29 + $0xe0] ss:$16 sps:$4 sm:$0xff]   ;;  %v1562_v33 = vld [vmem:[%s2071_s29 + $0xa8] ss:$16 sps:$4 sm:$0xff]   ;;  %v1563_v35 = vld [vmem:[%s2071_s29 + $0xcc] ss:$16 sps:$4 sm:$0xff]  }
  0xa5   : > { %695 = vmatpush1.bf16.msra.mxu0 %v1527_v7  ;;  %876 = vperm.xlu1 %1518, %v862_v30   ;;  %v1549_v34 = vld [vmem:[%s2231_s2] sm:$0xff]   ;;  %v1565_v36 = vld [vmem:[%s2071_s29 + $0xc8] ss:$16 sps:$4 sm:$0xff]   ;;  %v1566_v37 = vld [vmem:[%s2071_s29 + $0xec] ss:$16 sps:$4 sm:$0xff]  }
  0xa6   : > { %696 = vmatprep.subr.bf16.mxu0 %v1528_v8  ;;  %v1568_v38 = vld [vmem:[%s2071_s29 + $0xe8] ss:$16 sps:$4 sm:$0xff]   ;;  %v1569_v40 = vld [vmem:[%s2078_s25 + $0x40] sm:$0xff]   ;;  %v1573_v44 = vld [vmem:[%s2078_s25 + $0x50] sm:$0xff]  }
  0xa7   : > { %748 = vmatpush1.bf16.msra.mxu1 %v1552_v18  ;;  %v1556_v39 = vld [vmem:[%s2231_s2 + $0x8] sm:$0xff]   ;;  %v1570_v41 = vld [vmem:[%s2078_s25] sm:$0xff]   ;;  %v1574_v45 = vld [vmem:[%s2078_s25 + $0x10] sm:$0xff]  }
  0xa8   : > { %749 = vmatprep.subr.bf16.mxu1 %v1553_v19  ;;  %871 = vperm.xlu0 %1517, %v861_v28   ;;  %v1571_v42 = vld [vmem:[%s2078_s25 + $0x48] sm:$0xff]   ;;  %v1575_v46 = vld [vmem:[%s2078_s25 + $0x58] sm:$0xff]   ;;  %v1577_v48 = vld [vmem:[%s2078_s25 + $0x60] sm:$0xff]  }
  0xa9   : > { %697 = vmatpush1.bf16.msra.mxu0 %v1530_v11  ;;  %881 = vperm.xlu1 %1518, %v863_v31   ;;  %v1572_v43 = vld [vmem:[%s2078_s25 + $0x8] sm:$0xff]   ;;  %v1576_v47 = vld [vmem:[%s2078_s25 + $0x18] sm:$0xff]   ;;  %v1578_v49 = vld [vmem:[%s2078_s25 + $0x20] sm:$0xff]  }
  0xaa   : > { %698 = vmatprep.subr.bf16.mxu0 %v1531_v12  ;;  %v1579_v50 = vld [vmem:[%s2078_s25 + $0x68] sm:$0xff]   ;;  %v1581_v52 = vld [vmem:[%s2078_s25 + $0x70] sm:$0xff]   ;;  %v1583_v54 = vld [vmem:[%s2078_s25 + $0x78] sm:$0xff]  }
  0xab   : > { %750 = vmatpush1.bf16.msra.mxu1 %v1555_v23  ;;  %v1580_v51 = vld [vmem:[%s2078_s25 + $0x28] sm:$0xff]   ;;  %v1582_v53 = vld [vmem:[%s2078_s25 + $0x30] sm:$0xff]   ;;  %v1584_v55 = vld [vmem:[%s2078_s25 + $0x38] sm:$0xff]  }
  0xac   : > { %751 = vmatprep.subr.bf16.mxu1 %v1557_v25 }
  0xad   : > { %699 = vmatpush1.bf16.msra.mxu0 %v1533_v15 }
  0xae   : > { %700 = vmatprep.subr.bf16.mxu0 %v1534_v17 }
  0xaf   : > { %752 = vmatpush1.bf16.msra.mxu1 %v1559_v26 }
  0xb0   : > { %753 = vmatprep.subr.bf16.mxu1 %v1560_v29 }
  0xb1   : > { %701 = vmatpush1.bf16.msra.mxu0 %v1536_v20 }
  0xb2   : > { %702 = vmatprep.subr.bf16.mxu0 %v1537_v21 }
  0xb3   : > { %754 = vmatpush1.bf16.msra.mxu1 %v1562_v33 }
  0xb4   : > { %755 = vmatprep.subr.bf16.mxu1 %v1563_v35 }
  0xb5   : > { %703 = vmatpush1.bf16.msra.mxu0 %v1539_v22 }
  0xb6   : > { %704 = vmatprep.subr.bf16.mxu0 %v1543_v24 }
  0xb7   : > { %756 = vmatpush1.bf16.msra.mxu1 %v1565_v36 }
  0xb8   : > { %757 = vmatprep.subr.bf16.mxu1 %v1566_v37 }
  0xb9   : > { %705 = vmatpush1.bf16.msra.mxu0 %v1545_v32 }
  0xba   : > { %1365 = vmatprep.subr.bf16.mxu0 %v1569_v40 }
  0xbb   : > { %758 = vmatpush1.bf16.msra.mxu1 %v1568_v38 }
  0xbc   : > { %723 = vmatmul.mubr.bf16.vlgmr.msra.gmra.mrb[0].mxu0 %v1549_v34  ;;  %1393 = vmatprep.subr.bf16.mxu1 %v1569_v40 }
  0xbd   : > { %732 = vmatprep.mubr.bf16.mxu0 %v1809_v3  ;;  %1366 = vmatpush3.bf16.msra.mxu0 %v1570_v41 }
  0xbe   : > { %776 = vmatmul.mubr.bf16.vlgmr.msra.gmra.mrb[0].mxu1 %v1549_v34  ;;  %1367 = vmatprep.subr.bf16.mxu0 %v1571_v42 }
  0xbf   : > { %785 = vmatprep.mubr.bf16.mxu1 %v1809_v3  ;;  %1401 = vmatpush3.bf16.msra.mxu1 %v1570_v41 }
  0xc0   : > { %1394 = vmatprep.subr.bf16.mxu1 %v1571_v42 }
  0xc1   : > { %1368 = vmatpush3.bf16.msra.mxu0 %v1572_v43 }
  0xc2   : > { %1369 = vmatprep.subr.bf16.mxu0 %v1573_v44 }
  0xc3   : > { %1402 = vmatpush3.bf16.msra.mxu1 %v1572_v43 }
  0xc4   : > { %733 = vmatmul.mubr.bf16.gmra.mrb[4].mxu0 %v1556_v39  ;;  %1395 = vmatprep.subr.bf16.mxu1 %v1573_v44 }
  0xc5   : > { %1370 = vmatpush3.bf16.msra.mxu0 %v1574_v45 }
  0xc6   : > { %786 = vmatmul.mubr.bf16.gmra.mrb[4].mxu1 %v1556_v39  ;;  %1371 = vmatprep.subr.bf16.mxu0 %v1575_v46 }
  0xc7   : > { %1403 = vmatpush3.bf16.msra.mxu1 %v1574_v45 }
  0xc8   : > { %1396 = vmatprep.subr.bf16.mxu1 %v1575_v46 }
  0xc9   : > { %1372 = vmatpush3.bf16.msra.mxu0 %v1576_v47 }
  0xca   : > { %1373 = vmatprep.subr.bf16.mxu0 %v1577_v48 }
  0xcb   : > { %1404 = vmatpush3.bf16.msra.mxu1 %v1576_v47 }
  0xcc   : > { %1397 = vmatprep.subr.bf16.mxu1 %v1577_v48 }
  0xcd   : > { %1374 = vmatpush3.bf16.msra.mxu0 %v1578_v49 }
  0xce   : > { %1375 = vmatprep.subr.bf16.mxu0 %v1579_v50 }
  0xcf   : > { %1405 = vmatpush3.bf16.msra.mxu1 %v1578_v49 }
  0xd0   : > { %1398 = vmatprep.subr.bf16.mxu1 %v1579_v50 }
  0xd1   : > { %1376 = vmatpush3.bf16.msra.mxu0 %v1580_v51 }
  0xd2   : > { %1377 = vmatprep.subr.bf16.mxu0 %v1581_v52 }
  0xd3   : > { %1406 = vmatpush3.bf16.msra.mxu1 %v1580_v51 }
  0xd4   : > { %1399 = vmatprep.subr.bf16.mxu1 %v1581_v52 }
  0xd5   : > { %1378 = vmatpush3.bf16.msra.mxu0 %v1582_v53 }
  0xd6   : > { %1379 = vmatprep.subr.bf16.mxu0 %v1583_v54 }
  0xd7   : > { %1407 = vmatpush3.bf16.msra.mxu1 %v1582_v53 }
  0xd8   : > { %1400 = vmatprep.subr.bf16.mxu1 %v1583_v54 }
  0xd9   : > { %1380 = vmatpush3.bf16.msra.mxu0 %v1584_v55 }
  0xdb   : > { %1408 = vmatpush3.bf16.msra.mxu1 %v1584_v55 }
 0x123   : > { %v867_v31 = vpop.permute.xlu0 %866 }
 0x124   : > { %v877_v51 = vpop.permute.xlu1 %876 }
 0x127   : > { %v872_v43 = vpop.permute.xlu0 %871 }
 0x18f   : > { %v724_v56 = vpop.f32.mrb[0].mxu0 }
 0x190   : > { %v1312_v57 = vmul.f32 -1.442695, %v724_v56  ;;  %v726_v58 = vpop.f32.mrb[1].mxu0 }
 0x191   : > { %v1313_v59 = vmul.f32 -1.442695, %v726_v58  ;;  %v728_v60 = vpop.f32.mrb[2].mxu0  ;;  %v777_v5 = vpop.f32.mrb[0].mxu1 }
 0x192   : > { %1585 = vpow2.f32 %v1312_v57  ;;  %v1314_v61 = vmul.f32 -1.442695, %v728_v60  ;;  %v730_v62 = vpop.f32.mrb[3].mxu0  ;;  %v779_v8 = vpop.f32.mrb[1].mxu1 }
 0x193   : > { %1587 = vpow2.f32 %v1313_v59  ;;  %v1315_v63 = vmul.f32 -1.442695, %v730_v62  ;;  %v781_v10 = vpop.f32.mrb[2].mxu1 }
 0x194   : > { %1589 = vpow2.f32 %v1314_v61  ;;  %v783_v12 = vpop.f32.mrb[3].mxu1 }
 0x195   : > { %1591 = vpow2.f32 %v1315_v63 }
 0x197   : > { %v2157_v0 = vpop.f32.mrb[4].mxu0 }
 0x198   : > { %v1316_v1 = vmul.f32 -1.442695, %v2157_v0  ;;  %v2160_v2 = vpop.f32.mrb[5].mxu0 }
 0x199   : > { %v1317_v3 = vmul.f32 -1.442695, %v2160_v2  ;;  %v2163_v4 = vpop.f32.mrb[6].mxu0  ;;  %v787_v20 = vpop.f32.mrb[4].mxu1 }
 0x19a   : > { %1593 = vpow2.f32 %v1316_v1  ;;  %v1318_v6 = vmul.f32 -1.442695, %v2163_v4  ;;  %v2166_v7 = vpop.f32.mrb[7].mxu0  ;;  %v789_v21 = vpop.f32.mrb[5].mxu1 }
 0x19b   : > { %1595 = vpow2.f32 %v1317_v3  ;;  %v1319_v9 = vmul.f32 -1.442695, %v2166_v7  ;;  %v791_v22 = vpop.f32.mrb[6].mxu1  ;;  %v882_v3 = vpop.permute.xlu1 %881 }
 0x19c   : > { %v1586_v11 = vpop.eup %1585  ;;  %1597 = vpow2.f32 %v1318_v6  ;;  %v793_v24 = vpop.f32.mrb[7].mxu1 }
 0x19d   : > { %v1588_v13 = vpop.eup %1587  ;;  %v820_v14 = vadd.f32 1.0, %v1586_v11  ;;  %1599 = vpow2.f32 %v1319_v9 }
 0x19e   : > { %v1590_v15 = vpop.eup %1589  ;;  %v821_v16 = vadd.f32 1.0, %v1588_v13 }
 0x19f   : > { %v1592_v17 = vpop.eup %1591  ;;  %1601 = vrcp.f32 %v820_v14  ;;  %v822_v18 = vadd.f32 1.0, %v1590_v15  ;;  %v1074_v14 = vld [vmem:[#allocation2 + $0x8] sm:$0xff] }
 0x1a0   : > { %1603 = vrcp.f32 %v821_v16  ;;  %v823_v19 = vadd.f32 1.0, %v1592_v17 }
 0x1a1   : > { %1605 = vrcp.f32 %v822_v18 }
 0x1a2   : > { %1607 = vrcp.f32 %v823_v19 }
 0x1a4   : > { %v1594_v23 = vpop.eup %1593 }
 0x1a5   : > { %v1596_v25 = vpop.eup %1595  ;;  %v824_v26 = vadd.f32 1.0, %v1594_v23 }
 0x1a6   : > { %v1598_v27 = vpop.eup %1597  ;;  %v825_v28 = vadd.f32 1.0, %v1596_v25 }
 0x1a7   : > { %v1600_v29 = vpop.eup %1599  ;;  %1609 = vrcp.f32 %v824_v26  ;;  %v826_v30 = vadd.f32 1.0, %v1598_v27 }
 0x1a8   : > { %1611 = vrcp.f32 %v825_v28  ;;  %v827_v32 = vadd.f32 1.0, %v1600_v29 }
 0x1a9   : > { %v1602_v33 = vpop.eup %1601  ;;  %1613 = vrcp.f32 %v826_v30 }
 0x1aa   : > { %v1604_v34 = vpop.eup %1603  ;;  %v844_v35 = vmul.f32 %v1602_v33, %v724_v56  ;;  %1615 = vrcp.f32 %v827_v32 }
 0x1ab   : > { %v1606_v36 = vpop.eup %1605  ;;  %v845_v37 = vmul.f32 %v1604_v34, %v726_v58 }
 0x1ac   : > { %v1608_v38 = vpop.eup %1607  ;;  %v846_v39 = vmul.f32 %v1606_v36, %v728_v60  ;;  %v852_v40 = vmul.f32 %v844_v35, %v777_v5 }
 0x1ad   : > { %v847_v41 = vmul.f32 %v1608_v38, %v730_v62  ;;  %v853_v42 = vmul.f32 %v845_v37, %v779_v8 }
 0x1ae   : > { %v854_v44 = vmul.f32 %v846_v39, %v781_v10  ;;  %v884_v46 = vmul.f32 %v867_v31, %v852_v40 }
 0x1af   : > { %v855_v45 = vmul.f32 %v847_v41, %v783_v12  ;;  %v885_v49 = vmul.f32 %v867_v31, %v853_v42 }
 0x1b0   : > { %v886_v47 = vmul.f32 %v872_v43, %v854_v44 }
 0x1b1   : > { %v1610_v48 = vpop.eup %1609  ;;  %v887_v50 = vmul.f32 %v872_v43, %v855_v45 }
 0x1b2   : > { %v1612_v52 = vpop.eup %1611  ;;  %v848_v53 = vmul.f32 %v1610_v48, %v2157_v0  ;;  %v892_v54 = vpack.c.bf16 %v886_v47, %v884_v46 }
 0x1b3   : > { %v1614_v55 = vpop.eup %1613  ;;  %v849_v56 = vmul.f32 %v1612_v52, %v2160_v2  ;;  %v893_v57 = vpack.c.bf16 %v887_v50, %v885_v49 }
 0x1b4   : > { %v1616_v58 = vpop.eup %1615  ;;  %v850_v59 = vmul.f32 %v1614_v55, %v2163_v4  ;;  %v856_v60 = vmul.f32 %v848_v53, %v787_v20  ;;  %v1073_v4 = vld [vmem:[#allocation2] sm:$0xff]  ;;  %v1075_v20 = vld [vmem:[#allocation2 + $0x10] sm:$0xff] }
 0x1b5   : > { %v851_v61 = vmul.f32 %v1616_v58, %v2166_v7  ;;  %v857_v62 = vmul.f32 %v849_v56, %v789_v21  ;;  %1056 = vmatprep.mubr.bf16.mxu0 %v893_v57 }
 0x1b6   : > { %v858_v63 = vmul.f32 %v850_v59, %v791_v22  ;;  %1057 = vmatmul.mubr.bf16.vlgmr.msra.gmra.mrb[8].mxu0 %v892_v54  ;;  %v888_v5 = vmul.f32 %v877_v51, %v856_v60 }
 0x1b7   : > { %v859_v1 = vmul.f32 %v851_v61, %v793_v24  ;;  %v889_v0 = vmul.f32 %v877_v51, %v857_v62  ;;  %v1076_v24 = vld [vmem:[#allocation2 + $0x18] sm:$0xff] }
 0x1b8   : > { %v890_v6 = vmul.f32 %v882_v3, %v858_v63 }
 0x1b9   : > { %v891_v8 = vmul.f32 %v882_v3, %v859_v1 }
 0x1ba   : > { %v894_v9 = vpack.c.bf16 %v890_v6, %v888_v5 }
 0x1bb   : > { %v895_v10 = vpack.c.bf16 %v891_v8, %v889_v0 }
 0x1bd   : > { %1064 = vmatprep.mubr.bf16.mxu1 %v895_v10 }
 0x1be   : > { %1065 = vmatmul.mubr.bf16.vlgmr.msra.gmra.mrb[8].mxu1 %v894_v9 }
 0x289   : > { %v1381_v2 = vpop.f32.mrb[8].mxu0 }
 0x28a   : > { %v1382_v11 = vpop.f32.mrb[9].mxu0 }
 0x28b   : > { %v1383_v12 = vadd.f32 %v1382_v11, %v1381_v2  ;;  %v1384_v13 = vpop.f32.mrb[10].mxu0 }
 0x28c   : > { %v1385_v7 = vpop.f32.mrb[11].mxu0 }
 0x28d   : > { %v1077_v15 = vadd.f32 %v1383_v12, %v1073_v4  ;;  %v1386_v16 = vadd.f32 %v1385_v7, %v1384_v13 }
 0x28f   : > { %1081 = vst [vmem:[#allocation2] sm:$0xff] %v1077_v15  ;;  %v1078_v17 = vadd.f32 %v1386_v16, %v1074_v14 }
 0x291   : > { %1082 = vst [vmem:[#allocation2 + $0x8] sm:$0xff] %v1078_v17  ;;  %v1387_v18 = vpop.f32.mrb[8].mxu1 }
 0x292   : > { %v1388_v19 = vpop.f32.mrb[9].mxu1 }
 0x293   : > { %v1389_v21 = vadd.f32 %v1388_v19, %v1387_v18  ;;  %v1390_v22 = vpop.f32.mrb[10].mxu1 }
 0x294   : > { %v1391_v23 = vpop.f32.mrb[11].mxu1 }
 0x295   : > { %v1079_v25 = vadd.f32 %v1389_v21, %v1075_v20  ;;  %v1392_v26 = vadd.f32 %v1391_v23, %v1390_v22 }
 0x297   : > { %1083 = vst [vmem:[#allocation2 + $0x10] sm:$0xff] %v1079_v25  ;;  %v1080_v27 = vadd.f32 %v1392_v26, %v1076_v24 }
 0x299   : > { %1084 = vst [vmem:[#allocation2 + $0x18] sm:$0xff] %v1080_v27 }
 0x29a PF: > { %p1085_p8 = scmp.eq.s32.totalorder %s1791_s8, 7 }
 0x29b   : > { %v1090_v28 = vld [vmem:[#allocation2] sm:$0xff] (%p1085_p8)  ;;  %v1091_v29 = vld [vmem:[#allocation2 + $0x8] sm:$0xff] (%p1085_p8) }
 0x29c   : > { %1089 = sbr.rel (!%p1085_p8) target bundleno = 676 (0x2a4), region = 56  ;;  %v1357_v31 = vpack.c.bf16 (%p1085_p8), %v1091_v29, %v1090_v28 }
 0x29e   : > { %v1092_v30 = vld [vmem:[#allocation2 + $0x10] sm:$0xff] (%p1085_p8)  ;;  %1358 = vst [vmem:[#allocation11] sm:$0xff] (%p1085_p8), %v1357_v31  }
 0x2a0   : > { %v1093_v32 = vld [vmem:[#allocation2 + $0x18] sm:$0xff] (%p1085_p8) }
 0x2a1   : > { %v1362_v33 = vpack.c.bf16 (%p1085_p8), %v1093_v32, %v1092_v30 }
 0x2a3   : > { %1364 = vst [vmem:[#allocation11 + $0x8] sm:$0xff] %v1362_v33  }
 0x2a4 PF: > { %s2259_s29 = sadd.s32 4294967295, %s1799_s10   ;;  %s1810_s0 = smov [#allocation11]  }
 0x2a5   : > { %p2176_p2 = scmp.eq.s32.totalorder %s2259_s29, 7  ;;  %s1123_s24 = sshll.u32 %s1810_s0, 4  ;;  %s1124_s24 = int_to_ptr.vmem [resolvable:$true] %s1123_s24 }
 0x2a6   : > { %s1689_s8 = scalar_lea.vmem %s1124_s24, 256  ;;  %p1696_p13 = scmp.lt.s32.totalorder %s1124_s24, %s1124_s24 }
 0x2a7   : > { %p1690_p0 = scmp.ne.s32.totalorder %s1124_s24, %s1689_s8  ;;  %p1697_p7 = scmp.lt.s32.totalorder %s1689_s8, %s1689_s8 }
 0x2a9   : > { %p1691_p4 = pnand %p1690_p0, %p2176_p2  ;;  %p1698_p11 = por %p1697_p7, %p1696_p13 }
 0x2ab   : > { %p1692_p9 = pneg %p1691_p4 }
 0x2ad   : > { %p1699_p12 = pnand %p1698_p11, %p1692_p9 }
 0x2af   : > { %1702 = shalt.err (!%p1699_p12)
}
 0x2b0   : > { %s1703_s11 = scalar_lea.hbm %s2235_s6, 256 }
 0x2b1   : > { %p1704_p10 = scmp.ne.s32.totalorder %s2235_s6, %s1703_s11  ;;  %p1709_p3 = scmp.lt.u32.totalorder %s1703_s11, %s2235_s6 }
 0x2b3   : > { %p1705_p1 = pnand %p1704_p10, %p2176_p2 }
 0x2b5   : > { %p1706_p6 = pneg %p1705_p1 }
 0x2b7   : > { %p1711_p5 = pnand %p1709_p3, %p1706_p6 }
 0x2b9   : > { %1714 = shalt.err (!%p1711_p5)
}
 0x2ba   : > { %s1811_s12 = smov 64   ;;  %s1812_s26 = smov 4  }
 0x2bb   : > { %1418 = dma.vmem_to_hbm [thread:$0]  (%p2176_p2), %s1124_s24, 256, %s2235_s6, [#allocation8], %s1811_s12, %s1811_s12, %s1812_s26  }
 0x2bc   : > { %1762 = dma.done.wait (%p2176_p2), [#allocation8], 256  }
 0x2bd   : > { %1764 = vsyncadd (%p2176_p2), [#allocation8], 4294967040 }
 0x2be PF: > { %s30_s10 = sadd.s32 1, %s1799_s10   ;;  %s2261_s8 = sld [smem:[#allocation20_spill]] }
 0x2bf   : > { %p27_p8 = scmp.ge.s32.totalorder %s30_s10, 10   ;;  %s2262_s9 = sld [smem:[#allocation21_spill]] }
 0x2c0   : > { %s2263_s0 = smov %s1771_s1  ;;  %s2264_s1 = smov %s1775_s28 }
 0x2c1   : > { %s2265_s28 = smov %s2020_s3  ;;  %s2266_s29 = smov %s1783_s30 }
 0x2c2   : > { %s2267_s30 = smov %s1787_s7  ;;  %s2268_s7 = smov %s1942_s21 }
 0x2c3   :  { %29 = sbr.rel (!%p27_p8) target bundleno = 25 (0x19), region = 105 }
 0x2ca   :  { %1139 = vsyncpa [#allocation7], 1 }
 0x2cb   :  { %1141 = vsyncpa [#allocation7 + $0x1], 1 }
 0x2cc   :  { %1142 = vsyncpa [#allocation10], 1 }
 0x2cd   :  { %1144 = vsyncpa [#allocation10 + $0x1], 1 }
 0x2ce   :  { %1145 = vsyncpa [#allocation8], 1 }
 0x2cf   :  { %1147 = vsyncpa [#allocation8 + $0x1], 1 }

</bundles_post_ra>
